<compile_context>
chip_gen: v7x
topology: tpu7x:2x2x1
jax: 0.10.0
libtpu: 0.0.40
codegen_flags: <defaults>
</compile_context>

<pallas_src>
import functools

import jax
import jax.numpy as jnp
from jax.experimental import pallas as pl
from jax.experimental.pallas import tpu as pltpu


CONV_CH = 128                 # conv output channels (fixed by the module)
N_POS = 9                     # 3x3 spatial positions
N_TAP = 9                     # 3x3 kernel taps
FLAT = CONV_CH * N_POS        # 1152 = fc1 input features
TAP_PAD = 128                 # 81 (pos*9+tap) zero-padded to a full lane group
TB_MAX = 256                  # max batch tile per grid step


def _round_up(x, m):
    return (x + m - 1) // m * m


def _cdiv(a, b):
    return (a + b - 1) // b


def _choose_tiling(batch):
    """Batch tile (multiple of 8) and padded batch; >=2 tiles when possible (v7x)."""
    b8 = _round_up(batch, 8)
    n_tiles = _cdiv(b8, TB_MAX)
    if b8 >= 16:
        n_tiles = max(n_tiles, 2)       # let v7x shard across both TensorCores
    tb = _round_up(_cdiv(b8, n_tiles), 8)
    b_pad = _round_up(b8, tb)
    return tb, b_pad


# ---------------------------------------------------------------------------
# Pallas kernel: one batch tile (TB rows) per grid step, three MXU matmuls.
# ---------------------------------------------------------------------------
def reprnet_kernel(x_ref, wc_ref, bc_ref, w1_ref, b1_ref, w2_ref, b2_ref,
                   out_ref, conv_ref, h1_ref):
    # x_ref:    (TB, 128)    bf16  im2col taps, col = pos*9 + tap (zero-padded)
    # wc_ref:   (128, 1152)  bf16  block-diagonal conv weight, col = pos*128 + ch
    # bc_ref:   (1, 1152)    f32   conv bias tiled per position
    # w1_ref:   (1152, Hp)   bf16  fc1 weight, row = pos*128 + ch
    # b1_ref:   (1, Hp)      f32
    # w2_ref:   (Hp, Hp)     bf16
    # b2_ref:   (1, Hp)      f32
    # out_ref:  (TB, Hp)     f32
    # conv_ref: (TB, 1152)   bf16  scratch: relu(conv) already in fc1-input layout
    # h1_ref:   (TB, Hp)     bf16  scratch: relu(fc1)

    # Conv (one matmul, block-diagonal weight) + bias + relu.
    conv = jnp.dot(x_ref[...], wc_ref[...], preferred_element_type=jnp.float32)
    conv_ref[...] = jnp.maximum(conv + bc_ref[...], 0.0).astype(jnp.bfloat16)

    # fc1: single K=1152 matmul (MXU accumulates internally).
    h1 = jnp.dot(conv_ref[...], w1_ref[...], preferred_element_type=jnp.float32)
    h1_ref[...] = jnp.maximum(h1 + b1_ref[...], 0.0).astype(jnp.bfloat16)

    # fc2.
    out_ref[...] = (jnp.dot(h1_ref[...], w2_ref[...],
                            preferred_element_type=jnp.float32)
                    + b2_ref[...])


# ---------------------------------------------------------------------------
# Glue: im2col + parameter rearrangement + pallas_call wrapper.
# ---------------------------------------------------------------------------
def im2col_3x3_pad1(x):
    """x: (B, 1, 3, 3) -> (B, 81); column index = pos*9 + tap, pos=h*3+w, tap=kh*3+kw."""
    b = x.shape[0]
    xp = jnp.pad(x[:, 0], ((0, 0), (1, 1), (1, 1)))            # (B, 5, 5)
    cols = []
    for h in range(3):
        for w in range(3):
            cols.append(xp[:, h:h + 3, w:w + 3].reshape(b, N_TAP))
    return jnp.concatenate(cols, axis=1)                        # (B, 81)


@functools.partial(jax.jit, static_argnames=("hidden",))
def representations_net(x, params, hidden):
    """x: (B, 1, 3, 3) float32 NCHW. Returns (B, hidden) float32."""
    conv_w, conv_b, fc1_w, fc1_b, fc2_w, fc2_b = params
    batch = x.shape[0]

    tb, b_pad = _choose_tiling(batch)              # batch tile / padded batch
    hp = _round_up(hidden, 128)                    # lane-dense hidden

    # --- input prep: im2col, batch-pad, tap-pad 81 -> 128 lanes, bf16 ---------
    patches = im2col_3x3_pad1(x.astype(jnp.float32))                       # (B, 81)
    patches = jnp.pad(patches,
                      ((0, b_pad - batch), (0, TAP_PAD - N_POS * N_TAP)))
    patches = patches.astype(jnp.bfloat16)                                  # (B_pad, 128)

    # --- conv weight as a block-diagonal (128, 1152) matrix -------------------
    # block p: rows p*9..p*9+8 (taps of position p) -> cols p*128..p*128+127 (channels).
    wc_small = conv_w.reshape(CONV_CH, N_TAP).T                 # (9, 128) [tap, ch]
    wcd = jnp.kron(jnp.eye(N_POS, dtype=jnp.float32), wc_small)  # (81, 1152)
    wcd = jnp.pad(wcd, ((0, TAP_PAD - N_POS * N_TAP), (0, 0))).astype(jnp.bfloat16)
    bcd = jnp.tile(conv_b, (N_POS,)).reshape(1, FLAT)            # (1, 1152) f32

    # --- fc1 weight: PyTorch input index c*9+p (channel-major flatten)
    #     rearranged so row index = p*128 + c, matching the conv scratch layout.
    w1 = fc1_w.T.reshape(CONV_CH, N_POS, hidden).transpose(1, 0, 2).reshape(FLAT, hidden)
    w1 = jnp.pad(w1, ((0, 0), (0, hp - hidden))).astype(jnp.bfloat16)
    b1 = jnp.pad(fc1_b.reshape(1, hidden), ((0, 0), (0, hp - hidden)))

    # --- fc2 weight (in, out), zero-padded to (Hp, Hp) -------------------------
    w2 = jnp.pad(fc2_w.T, ((0, hp - hidden), (0, hp - hidden))).astype(jnp.bfloat16)
    b2 = jnp.pad(fc2_b.reshape(1, hidden), ((0, 0), (0, hp - hidden)))

    # --- explicit VMEM budget ---------------------------------------------------
    vmem_bytes = (
        2 * tb * TAP_PAD * 2          # patches (2 pipeline buffers, bf16)
        + TAP_PAD * FLAT * 2          # block-diag conv weight (single buffer)
        + FLAT * hp * 2               # fc1 weight
        + hp * hp * 2                 # fc2 weight
        + (FLAT + 2 * hp) * 4         # biases (f32)
        + 2 * tb * hp * 4             # output (2 pipeline buffers, f32)
        + tb * FLAT * 2               # conv scratch (bf16)
        + tb * hp * 2                 # h1 scratch (bf16)
    )
    vmem_limit = int(min(max(2 * vmem_bytes, 32 * 1024 * 1024), 64 * 1024 * 1024))

    def weight_spec(shape):
        # Constant-index weights: single-buffered (no pointless double-buffering).
        return pl.BlockSpec(shape, lambda i: (0, 0), pipeline_mode=pl.Buffered(1))

    out = pl.pallas_call(
        reprnet_kernel,
        out_shape=jax.ShapeDtypeStruct((b_pad, hp), jnp.float32),
        grid_spec=pltpu.PrefetchScalarGridSpec(
            num_scalar_prefetch=0,
            grid=(b_pad // tb,),
            in_specs=[
                pl.BlockSpec((tb, TAP_PAD), lambda i: (i, 0)),   # patches (streamed)
                weight_spec((TAP_PAD, FLAT)),                    # wcd
                weight_spec((1, FLAT)),                          # bcd
                weight_spec((FLAT, hp)),                         # w1
                weight_spec((1, hp)),                            # b1
                weight_spec((hp, hp)),                           # w2
                weight_spec((1, hp)),                            # b2
            ],
            out_specs=pl.BlockSpec((tb, hp), lambda i: (i, 0)),
            scratch_shapes=[
                pltpu.VMEM((tb, FLAT), jnp.bfloat16),            # relu(conv)
                pltpu.VMEM((tb, hp), jnp.bfloat16),              # relu(fc1)
            ],
        ),
        compiler_params=pltpu.CompilerParams(
            dimension_semantics=("parallel",),
            vmem_limit_bytes=vmem_limit),
    )(patches, wcd, bcd, w1, b1, w2, b2)

    return out[:batch, :hidden]


def init_params(key, hidden):
    """Deterministic synthetic parameters with PyTorch-like shapes."""
    k = jax.random.split(key, 6)
    conv_w = 0.1 * jax.random.normal(k[0], (CONV_CH, 1, 3, 3), jnp.float32)
    conv_b = 0.1 * jax.random.normal(k[1], (CONV_CH,), jnp.float32)
    fc1_w = 0.05 * jax.random.normal(k[2], (hidden, CONV_CH * 3 * 3), jnp.float32)
    fc1_b = 0.05 * jax.random.normal(k[3], (hidden,), jnp.float32)
    fc2_w = 0.05 * jax.random.normal(k[4], (hidden, hidden), jnp.float32)
    fc2_b = 0.05 * jax.random.normal(k[5], (hidden,), jnp.float32)
    return conv_w, conv_b, fc1_w, fc1_b, fc2_w, fc2_b


def reference_forward(x, params, hidden):
    """Pure-JAX f32 reference matching the PyTorch forward exactly."""
    conv_w, conv_b, fc1_w, fc1_b, fc2_w, fc2_b = params
    b = x.shape[0]
    patches = im2col_3x3_pad1(x).reshape(b, N_POS, N_TAP)          # (B, 9, 9)
    wc = conv_w.reshape(CONV_CH, N_TAP).T                          # (9, 128)
    conv = jnp.maximum(jnp.einsum("bpk,kc->bpc", patches, wc) + conv_b, 0.0)
    flat = conv.transpose(0, 2, 1).reshape(b, CONV_CH * N_POS)     # channel-major
    h1 = jnp.maximum(flat @ fc1_w.T + fc1_b, 0.0)
    return h1 @ fc2_w.T + fc2_b


if __name__ == "__main__":
    hidden = 32
    batch = 2

    key = jax.random.PRNGKey(0)
    kx, kp = jax.random.split(key)
    # Tic-tac-toe board input: (B, 1, 3, 3), NCHW like PyTorch.
    x = jax.random.normal(kx, (batch, 1, 3, 3), jnp.float32)
    params = init_params(kp, hidden)

    out = representations_net(x, params, hidden)
    out = jax.block_until_ready(out)

    ref = reference_forward(x, params, hidden)
    assert out.shape == (batch, hidden)
    # bf16 matmul operands with f32 accumulation -> loosened tolerance vs f32 reference.
    assert jnp.allclose(out, ref, rtol=2e-2, atol=2e-2), "mismatch vs reference"

    print("KERNEL_OK")
</pallas_src>

<mosaic_0001>
module attributes {stable_mosaic.version = 11 : i64} {
  func.func @reprnet_kernel(%arg0: i32, %arg1: memref<8x128xbf16, #tpu.memory_space<vmem>>, %arg2: memref<128x1152xbf16, #tpu.memory_space<vmem>>, %arg3: memref<1x1152xf32, #tpu.memory_space<vmem>>, %arg4: memref<1152x128xbf16, #tpu.memory_space<vmem>>, %arg5: memref<1x128xf32, #tpu.memory_space<vmem>>, %arg6: memref<128x128xbf16, #tpu.memory_space<vmem>>, %arg7: memref<1x128xf32, #tpu.memory_space<vmem>>, %arg8: memref<8x128xf32, #tpu.memory_space<vmem>>, %arg9: memref<8x1152xbf16, #tpu.memory_space<vmem>>, %arg10: memref<8x128xbf16, #tpu.memory_space<vmem>>) attributes {dimension_semantics = [#tpu.dimension_semantics<parallel>], iteration_bounds = array<i64: 1>, scalar_prefetch = 0 : i64, scratch_operands = 2 : i64, tpu.core_type = #tpu.core_type<tc>, window_params = [{transform_indices = @transform_0, window_bounds = array<i64: 8, 128>}, {pipeline_mode = #tpu.pipeline_mode<synchronous>, transform_indices = @transform_1, window_bounds = array<i64: 128, 1152>}, {pipeline_mode = #tpu.pipeline_mode<synchronous>, transform_indices = @transform_2, window_bounds = array<i64: 1, 1152>}, {pipeline_mode = #tpu.pipeline_mode<synchronous>, transform_indices = @transform_3, window_bounds = array<i64: 1152, 128>}, {pipeline_mode = #tpu.pipeline_mode<synchronous>, transform_indices = @transform_4, window_bounds = array<i64: 1, 128>}, {pipeline_mode = #tpu.pipeline_mode<synchronous>, transform_indices = @transform_5, window_bounds = array<i64: 128, 128>}, {pipeline_mode = #tpu.pipeline_mode<synchronous>, transform_indices = @transform_6, window_bounds = array<i64: 1, 128>}, {transform_indices = @transform_7, window_bounds = array<i64: 8, 128>}]} {
    %c0 = arith.constant 0 : index
    %c0_0 = arith.constant 0 : index
    %0 = vector.load %arg1[%c0, %c0_0] : memref<8x128xbf16, #tpu.memory_space<vmem>>, vector<8x128xbf16>
    %c0_1 = arith.constant 0 : index
    %c0_2 = arith.constant 0 : index
    %1 = vector.load %arg2[%c0_1, %c0_2] : memref<128x1152xbf16, #tpu.memory_space<vmem>>, vector<128x1152xbf16>
    %cst = arith.constant dense<0.000000e+00> : vector<8x1152xf32>
    %2 = tpu.matmul %0, %1, %cst {dimension_numbers = #tpu.dot_dimension_numbers<[1], [0], [0], [1], [0, 0, 1, 1], [], []>} : vector<8x128xbf16>, vector<128x1152xbf16>, vector<8x1152xf32> -> vector<8x1152xf32>
    %c0_3 = arith.constant 0 : index
    %c0_4 = arith.constant 0 : index
    %3 = vector.load %arg3[%c0_3, %c0_4] : memref<1x1152xf32, #tpu.memory_space<vmem>>, vector<1x1152xf32>
    %4 = vector.broadcast %3 : vector<1x1152xf32> to vector<8x1152xf32>
    %5 = arith.addf %2, %4 : vector<8x1152xf32>
    %cst_5 = arith.constant 0.000000e+00 : f32
    %6 = vector.broadcast %cst_5 : f32 to vector<8x1152xf32>
    %7 = arith.maximumf %5, %6 : vector<8x1152xf32>
    %8 = arith.truncf %7 : vector<8x1152xf32> to vector<8x1152xbf16>
    %c0_6 = arith.constant 0 : index
    %c0_7 = arith.constant 0 : index
    %9 = vector.load %arg9[%c0_6, %c0_7] : memref<8x1152xbf16, #tpu.memory_space<vmem>>, vector<8x1152xbf16>
    tpu.vector_store %arg9[%c0_6, %c0_7], %8 {strides = array<i32>} : memref<8x1152xbf16, #tpu.memory_space<vmem>>, vector<8x1152xbf16>,
    %c0_8 = arith.constant 0 : index
    %c0_9 = arith.constant 0 : index
    %10 = vector.load %arg9[%c0_8, %c0_9] : memref<8x1152xbf16, #tpu.memory_space<vmem>>, vector<8x1152xbf16>
    %c0_10 = arith.constant 0 : index
    %c0_11 = arith.constant 0 : index
    %11 = vector.load %arg4[%c0_10, %c0_11] : memref<1152x128xbf16, #tpu.memory_space<vmem>>, vector<1152x128xbf16>
    %cst_12 = arith.constant dense<0.000000e+00> : vector<8x128xf32>
    %12 = tpu.matmul %10, %11, %cst_12 {dimension_numbers = #tpu.dot_dimension_numbers<[1], [0], [0], [1], [0, 0, 1, 1], [], []>} : vector<8x1152xbf16>, vector<1152x128xbf16>, vector<8x128xf32> -> vector<8x128xf32>
    %c0_13 = arith.constant 0 : index
    %c0_14 = arith.constant 0 : index
    %13 = vector.load %arg5[%c0_13, %c0_14] : memref<1x128xf32, #tpu.memory_space<vmem>>, vector<1x128xf32>
    %14 = vector.broadcast %13 : vector<1x128xf32> to vector<8x128xf32>
    %15 = arith.addf %12, %14 : vector<8x128xf32>
    %cst_15 = arith.constant 0.000000e+00 : f32
    %16 = vector.broadcast %cst_15 : f32 to vector<8x128xf32>
    %17 = arith.maximumf %15, %16 : vector<8x128xf32>
    %18 = arith.truncf %17 : vector<8x128xf32> to vector<8x128xbf16>
    %c0_16 = arith.constant 0 : index
    %c0_17 = arith.constant 0 : index
    %19 = vector.load %arg10[%c0_16, %c0_17] : memref<8x128xbf16, #tpu.memory_space<vmem>>, vector<8x128xbf16>
    tpu.vector_store %arg10[%c0_16, %c0_17], %18 {strides = array<i32>} : memref<8x128xbf16, #tpu.memory_space<vmem>>, vector<8x128xbf16>,
    %c0_18 = arith.constant 0 : index
    %c0_19 = arith.constant 0 : index
    %20 = vector.load %arg10[%c0_18, %c0_19] : memref<8x128xbf16, #tpu.memory_space<vmem>>, vector<8x128xbf16>
    %c0_20 = arith.constant 0 : index
    %c0_21 = arith.constant 0 : index
    %21 = vector.load %arg6[%c0_20, %c0_21] : memref<128x128xbf16, #tpu.memory_space<vmem>>, vector<128x128xbf16>
    %cst_22 = arith.constant dense<0.000000e+00> : vector<8x128xf32>
    %22 = tpu.matmul %20, %21, %cst_22 {dimension_numbers = #tpu.dot_dimension_numbers<[1], [0], [0], [1], [0, 0, 1, 1], [], []>} : vector<8x128xbf16>, vector<128x128xbf16>, vector<8x128xf32> -> vector<8x128xf32>
    %c0_23 = arith.constant 0 : index
    %c0_24 = arith.constant 0 : index
    %23 = vector.load %arg7[%c0_23, %c0_24] : memref<1x128xf32, #tpu.memory_space<vmem>>, vector<1x128xf32>
    %24 = vector.broadcast %23 : vector<1x128xf32> to vector<8x128xf32>
    %25 = arith.addf %22, %24 : vector<8x128xf32>
    %c0_25 = arith.constant 0 : index
    %c0_26 = arith.constant 0 : index
    %26 = vector.load %arg8[%c0_25, %c0_26] : memref<8x128xf32, #tpu.memory_space<vmem>>, vector<8x128xf32>
    tpu.vector_store %arg8[%c0_25, %c0_26], %25 {strides = array<i32>} : memref<8x128xf32, #tpu.memory_space<vmem>>, vector<8x128xf32>,
    return
  }
  func.func @transform_0(%arg0: i32) -> (i32, i32) {
    %c0_i32 = arith.constant 0 : i32
    %c0_i32_0 = arith.constant 0 : i32
    return %arg0, %c0_i32 : i32, i32
  }
  func.func @transform_1(%arg0: i32) -> (i32, i32) {
    %c0_i32 = arith.constant 0 : i32
    %c0_i32_0 = arith.constant 0 : i32
    %c0_i32_1 = arith.constant 0 : i32
    return %c0_i32, %c0_i32_0 : i32, i32
  }
  func.func @transform_2(%arg0: i32) -> (i32, i32) {
    %c0_i32 = arith.constant 0 : i32
    %c0_i32_0 = arith.constant 0 : i32
    %c0_i32_1 = arith.constant 0 : i32
    return %c0_i32, %c0_i32_0 : i32, i32
  }
  func.func @transform_3(%arg0: i32) -> (i32, i32) {
    %c0_i32 = arith.constant 0 : i32
    %c0_i32_0 = arith.constant 0 : i32
    %c0_i32_1 = arith.constant 0 : i32
    return %c0_i32, %c0_i32_0 : i32, i32
  }
  func.func @transform_4(%arg0: i32) -> (i32, i32) {
    %c0_i32 = arith.constant 0 : i32
    %c0_i32_0 = arith.constant 0 : i32
    %c0_i32_1 = arith.constant 0 : i32
    return %c0_i32, %c0_i32_0 : i32, i32
  }
  func.func @transform_5(%arg0: i32) -> (i32, i32) {
    %c0_i32 = arith.constant 0 : i32
    %c0_i32_0 = arith.constant 0 : i32
    %c0_i32_1 = arith.constant 0 : i32
    return %c0_i32, %c0_i32_0 : i32, i32
  }
  func.func @transform_6(%arg0: i32) -> (i32, i32) {
    %c0_i32 = arith.constant 0 : i32
    %c0_i32_0 = arith.constant 0 : i32
    %c0_i32_1 = arith.constant 0 : i32
    return %c0_i32, %c0_i32_0 : i32, i32
  }
  func.func @transform_7(%arg0: i32) -> (i32, i32) {
    %c0_i32 = arith.constant 0 : i32
    %c0_i32_0 = arith.constant 0 : i32
    return %arg0, %c0_i32 : i32, i32
  }
}

</mosaic_0001>

<bundles_post_ra>
// kernel: representations_net.1
= control target key start
LH: loop header
LB: loop body
LE: loop exit
PB: predicated region body
PF: predicated region fallthrough
CT: control target
= control target key end

     0   :  { %v2265_v1 = vmov 0   ;;  %vm2267_vm0 = vmmov 0   ;;  %s2843_s1 = inlined_call_operand.vmem [shape: bf16[128,1152], index: 1, kind: input, shape index: {}]   ;;  %s2844_s0 = inlined_call_operand.vmem [shape: bf16[8,128], index: 0, kind: input, shape index: {}]   ;;  %s2845_s3 = inlined_call_operand.vmem [shape: bf16[1152,128], index: 3, kind: input, shape index: {}]   ;;  %s2846_s2 = inlined_call_operand.vmem [shape: f32[1,1152], index: 2, kind: input, shape index: {}]   ;;  %s2847_s5 = inlined_call_operand.vmem [shape: bf16[128,128], index: 5, kind: input, shape index: {}]   ;;  %s2848_s4 = inlined_call_operand.vmem [shape: f32[1,128], index: 4, kind: input, shape index: {}]   ;;  %s2849_s6 = inlined_call_operand.vmem [shape: f32[1,128], index: 6, kind: input, shape index: {}]   ;;  %s2850_s7 = inlined_call_operand.vmem [shape: f32[8,128], index: 7, kind: output, shape index: {}]  }
   0x1   :  { %v2072_v0 = vld [vmem:[%s2843_s1 + $0x4] ss:$36 sps:$4 sm:$0xff]   ;;  %557 = vmatprep.mubr.bf16.mxu0 %v2265_v1  ;;  %598 = vmatprep.mubr.bf16.mxu1 %v2265_v1  ;;  %v2075_v3 = vld [vmem:[%s2843_s1 + $0xc] ss:$36 sps:$4 sm:$0xff]   ;;  %v2081_v7 = vld [vmem:[%s2843_s1 + $0x54] ss:$36 sps:$4 sm:$0xff]  }
   0x2   :  { %v2074_v2 = vld [vmem:[%s2843_s1] ss:$36 sps:$4 sm:$0xff]   ;;  %525 = vmatprep.subr.bf16.mxu0 %v2072_v0  ;;  %v2077_v4 = vld [vmem:[%s2843_s1 + $0x8] ss:$36 sps:$4 sm:$0xff]   ;;  %566 = vmatprep.subr.bf16.mxu1 %v2075_v3  ;;  %v2083_v8 = vld [vmem:[%s2843_s1 + $0x50] ss:$36 sps:$4 sm:$0xff]  }
   0x3   :  { %526 = vmatpush1.bf16.msra.mxu0 %v2074_v2  ;;  %v2078_v5 = vld [vmem:[%s2843_s1 + $0x4c] ss:$36 sps:$4 sm:$0xff]   ;;  %567 = vmatpush1.bf16.msra.mxu1 %v2077_v4  ;;  %v2084_v9 = vld [vmem:[%s2843_s1 + $0x94] ss:$36 sps:$4 sm:$0xff]   ;;  %v2087_v11 = vld [vmem:[%s2843_s1 + $0x9c] ss:$36 sps:$4 sm:$0xff]  }
   0x4   :  { %v2080_v6 = vld [vmem:[%s2843_s1 + $0x48] ss:$36 sps:$4 sm:$0xff]   ;;  %527 = vmatprep.subr.bf16.mxu0 %v2078_v5  ;;  %568 = vmatprep.subr.bf16.mxu1 %v2081_v7  ;;  %v2086_v10 = vld [vmem:[%s2843_s1 + $0x90] ss:$36 sps:$4 sm:$0xff]   ;;  %v2090_v12 = vld [vmem:[%s2843_s1 + $0xdc] ss:$36 sps:$4 sm:$0xff]  }
   0x5   :  { %v2089_v13 = vld [vmem:[%s2843_s1 + $0x98] ss:$36 sps:$4 sm:$0xff]   ;;  %v2093_v14 = vld [vmem:[%s2843_s1 + $0xe4] ss:$36 sps:$4 sm:$0xff]   ;;  %v2099_v18 = vld [vmem:[%s2843_s1 + $0x12c] ss:$36 sps:$4 sm:$0xff]  }
   0x6   :  { %v2092_v15 = vld [vmem:[%s2843_s1 + $0xd8] ss:$36 sps:$4 sm:$0xff]   ;;  %v2096_v16 = vld [vmem:[%s2843_s1 + $0x124] ss:$36 sps:$4 sm:$0xff]   ;;  %v2102_v20 = vld [vmem:[%s2843_s1 + $0x16c] ss:$36 sps:$4 sm:$0xff]  }
   0x7   :  { %528 = vmatpush1.bf16.msra.mxu0 %v2080_v6  ;;  %569 = vmatpush1.bf16.msra.mxu1 %v2083_v8  ;;  %v2095_v17 = vld [vmem:[%s2843_s1 + $0xe0] ss:$36 sps:$4 sm:$0xff]   ;;  %v2101_v21 = vld [vmem:[%s2843_s1 + $0x128] ss:$36 sps:$4 sm:$0xff]   ;;  %v2105_v22 = vld [vmem:[%s2843_s1 + $0x174] ss:$36 sps:$4 sm:$0xff]  }
   0x8   :  { %529 = vmatprep.subr.bf16.mxu0 %v2084_v9  ;;  %570 = vmatprep.subr.bf16.mxu1 %v2087_v11  ;;  %v2098_v19 = vld [vmem:[%s2843_s1 + $0x120] ss:$36 sps:$4 sm:$0xff]   ;;  %v2104_v23 = vld [vmem:[%s2843_s1 + $0x168] ss:$36 sps:$4 sm:$0xff]   ;;  %v2108_v24 = vld [vmem:[%s2843_s1 + $0x1b4] ss:$36 sps:$4 sm:$0xff]  }
   0x9   :  { %v2107_v25 = vld [vmem:[%s2843_s1 + $0x170] ss:$36 sps:$4 sm:$0xff]   ;;  %v2111_v26 = vld [vmem:[%s2843_s1 + $0x1bc] ss:$36 sps:$4 sm:$0xff]   ;;  %v2117_v30 = vld [vmem:[%s2843_s1 + $0x204] ss:$36 sps:$4 sm:$0xff]  }
   0xa   :  { %v2110_v27 = vld [vmem:[%s2843_s1 + $0x1b0] ss:$36 sps:$4 sm:$0xff]   ;;  %v2114_v28 = vld [vmem:[%s2843_s1 + $0x1fc] ss:$36 sps:$4 sm:$0xff]   ;;  %v2131_v39 = vld [vmem:[%s2843_s1 + $0x64] ss:$36 sps:$4 sm:$0xff]  }
   0xb   :  { %530 = vmatpush1.bf16.msra.mxu0 %v2086_v10  ;;  %571 = vmatpush1.bf16.msra.mxu1 %v2089_v13  ;;  %v2113_v29 = vld [vmem:[%s2843_s1 + $0x1b8] ss:$36 sps:$4 sm:$0xff]   ;;  %v2119_v33 = vld [vmem:[%s2843_s1 + $0x200] ss:$36 sps:$4 sm:$0xff]   ;;  %v2120_v36 = vld [vmem:[%s2843_s1 + $0x10] ss:$36 sps:$4 sm:$0xff]  }
   0xc   :  { %531 = vmatprep.subr.bf16.mxu0 %v2090_v12  ;;  %572 = vmatprep.subr.bf16.mxu1 %v2093_v14  ;;  %v2116_v31 = vld [vmem:[%s2843_s1 + $0x1f8] ss:$36 sps:$4 sm:$0xff]   ;;  %v2412_v34 = vld [vmem:[%s2844_s0] sm:$0xf]  ;;  %v2134_v41 = vld [vmem:[%s2843_s1 + $0xa4] ss:$36 sps:$4 sm:$0xff]  }
   0xd   :  { %v2122_v32 = vld [vmem:[%s2843_s1 + $0x14] ss:$36 sps:$4 sm:$0xff]   ;;  %v2125_v35 = vld [vmem:[%s2843_s1 + $0x1c] ss:$36 sps:$4 sm:$0xff]   ;;  %v2137_v43 = vld [vmem:[%s2843_s1 + $0xac] ss:$36 sps:$4 sm:$0xff]  }
   0xe   :  { %v2128_v37 = vld [vmem:[%s2843_s1 + $0x5c] ss:$36 sps:$4 sm:$0xff]   ;;  %v2140_v45 = vld [vmem:[%s2843_s1 + $0xec] ss:$36 sps:$4 sm:$0xff]   ;;  %v2143_v47 = vld [vmem:[%s2843_s1 + $0xf4] ss:$36 sps:$4 sm:$0xff]  }
   0xf   :  { %532 = vmatpush1.bf16.msra.mxu0 %v2092_v15  ;;  %573 = vmatpush1.bf16.msra.mxu1 %v2095_v17  ;;  %v2123_v38 = vld [vmem:[%s2843_s1 + $0x18] ss:$36 sps:$4 sm:$0xff]   ;;  %v2129_v42 = vld [vmem:[%s2843_s1 + $0x60] ss:$36 sps:$4 sm:$0xff]   ;;  %v2135_v46 = vld [vmem:[%s2843_s1 + $0xa8] ss:$36 sps:$4 sm:$0xff]  }
  0x10   :  { %533 = vmatprep.subr.bf16.mxu0 %v2096_v16  ;;  %574 = vmatprep.subr.bf16.mxu1 %v2099_v18  ;;  %v2126_v40 = vld [vmem:[%s2843_s1 + $0x58] ss:$36 sps:$4 sm:$0xff]   ;;  %v2132_v44 = vld [vmem:[%s2843_s1 + $0xa0] ss:$36 sps:$4 sm:$0xff]   ;;  %v2138_v48 = vld [vmem:[%s2843_s1 + $0xe8] ss:$36 sps:$4 sm:$0xff]  }
  0x11   :  { %v2146_v49 = vld [vmem:[%s2843_s1 + $0x134] ss:$36 sps:$4 sm:$0xff]   ;;  %v2149_v51 = vld [vmem:[%s2843_s1 + $0x13c] ss:$36 sps:$4 sm:$0xff]   ;;  %v2155_v55 = vld [vmem:[%s2843_s1 + $0x184] ss:$36 sps:$4 sm:$0xff]  }
  0x12   :  { %v2141_v50 = vld [vmem:[%s2843_s1 + $0xf0] ss:$36 sps:$4 sm:$0xff]   ;;  %v2152_v53 = vld [vmem:[%s2843_s1 + $0x17c] ss:$36 sps:$4 sm:$0xff]   ;;  %v2158_v57 = vld [vmem:[%s2843_s1 + $0x1c4] ss:$36 sps:$4 sm:$0xff]  }
  0x13   :  { %534 = vmatpush1.bf16.msra.mxu0 %v2098_v19  ;;  %575 = vmatpush1.bf16.msra.mxu1 %v2101_v21  ;;  %v2144_v52 = vld [vmem:[%s2843_s1 + $0x130] ss:$36 sps:$4 sm:$0xff]   ;;  %v2147_v54 = vld [vmem:[%s2843_s1 + $0x138] ss:$36 sps:$4 sm:$0xff]   ;;  %v2153_v58 = vld [vmem:[%s2843_s1 + $0x180] ss:$36 sps:$4 sm:$0xff]  }
  0x14   :  { %535 = vmatprep.subr.bf16.mxu0 %v2102_v20  ;;  %576 = vmatprep.subr.bf16.mxu1 %v2105_v22  ;;  %v2150_v56 = vld [vmem:[%s2843_s1 + $0x178] ss:$36 sps:$4 sm:$0xff]   ;;  %v2161_v59 = vld [vmem:[%s2843_s1 + $0x1cc] ss:$36 sps:$4 sm:$0xff]   ;;  %v2156_v60 = vld [vmem:[%s2843_s1 + $0x1c0] ss:$36 sps:$4 sm:$0xff]  }
  0x15   :  { %v2164_v61 = vld [vmem:[%s2843_s1 + $0x20c] ss:$36 sps:$4 sm:$0xff]   ;;  %v2167_v63 = vld [vmem:[%s2843_s1 + $0x214] ss:$36 sps:$4 sm:$0xff]   ;;  %v2176_v2 = vld [vmem:[%s2845_s3 + $0x40] sm:$0xff]   ;;  %v2266_v4 = vmov 0.0  }
  0x16   :  { %v2159_v62 = vld [vmem:[%s2843_s1 + $0x1c8] ss:$36 sps:$4 sm:$0xff]   ;;  %v2168_v3 = vld [vmem:[%s2843_s1 + $0x20] ss:$36 sps:$4 sm:$0xff]   ;;  %v2183_v9 = vld [vmem:[%s2845_s3 + $0x50] sm:$0xff]  }
  0x17   :  { %536 = vmatpush1.bf16.msra.mxu0 %v2104_v23  ;;  %577 = vmatpush1.bf16.msra.mxu1 %v2107_v25  ;;  %v2162_v0 = vld [vmem:[%s2843_s1 + $0x208] ss:$36 sps:$4 sm:$0xff]   ;;  %v2177_v5 = vld [vmem:[%s2845_s3] sm:$0xff]   ;;  %v2170_v10 = vld [vmem:[%s2843_s1 + $0xb0] ss:$36 sps:$4 sm:$0xff]  }
  0x18   :  { %537 = vmatprep.subr.bf16.mxu0 %v2108_v24  ;;  %578 = vmatprep.subr.bf16.mxu1 %v2111_v26  ;;  %v2169_v6 = vld [vmem:[%s2843_s1 + $0x68] ss:$36 sps:$4 sm:$0xff]   ;;  %v2185_v11 = vld [vmem:[%s2845_s3 + $0x10] sm:$0xff]   ;;  %v2187_v12 = vld [vmem:[%s2845_s3 + $0x58] sm:$0xff]  }
  0x19   :  { %v2179_v7 = vld [vmem:[%s2845_s3 + $0x48] sm:$0xff]   ;;  %v2171_v13 = vld [vmem:[%s2843_s1 + $0xf8] ss:$36 sps:$4 sm:$0xff]   ;;  %v2172_v15 = vld [vmem:[%s2843_s1 + $0x140] ss:$36 sps:$4 sm:$0xff]  }
  0x1a   :  { %v2181_v8 = vld [vmem:[%s2845_s3 + $0x8] sm:$0xff]   ;;  %v2189_v14 = vld [vmem:[%s2845_s3 + $0x18] sm:$0xff]   ;;  %v2174_v17 = vld [vmem:[%s2843_s1 + $0x1d0] ss:$36 sps:$4 sm:$0xff]  }
  0x1b   :  { %538 = vmatpush1.bf16.msra.mxu0 %v2110_v27  ;;  %579 = vmatpush1.bf16.msra.mxu1 %v2113_v29  ;;  %v2173_v16 = vld [vmem:[%s2843_s1 + $0x188] ss:$36 sps:$4 sm:$0xff]   ;;  %v2175_v18 = vld [vmem:[%s2843_s1 + $0x218] ss:$36 sps:$4 sm:$0xff]   ;;  %v2178_v19 = vld [vmem:[%s2845_s3 + $0xc0] sm:$0xff]  }
  0x1c   :  { %539 = vmatprep.subr.bf16.mxu0 %v2114_v28  ;;  %580 = vmatprep.subr.bf16.mxu1 %v2117_v30  ;;  %v2180_v20 = vld [vmem:[%s2845_s3 + $0x80] sm:$0xff]   ;;  %v2182_v21 = vld [vmem:[%s2845_s3 + $0xc8] sm:$0xff]   ;;  %v2186_v23 = vld [vmem:[%s2845_s3 + $0xd0] sm:$0xff]  }
  0x1d   :  { %v2184_v22 = vld [vmem:[%s2845_s3 + $0x88] sm:$0xff]   ;;  %v2188_v24 = vld [vmem:[%s2845_s3 + $0x90] sm:$0xff]   ;;  %v2190_v25 = vld [vmem:[%s2845_s3 + $0xd8] sm:$0xff]  }
  0x1e   :  { %v2192_v26 = vld [vmem:[%s2845_s3 + $0x98] sm:$0xff]   ;;  %v2191_v27 = vld [vmem:[%s2845_s3 + $0x60] sm:$0xff]  }
  0x1f   :  { %540 = vmatpush1.bf16.msra.mxu0 %v2116_v31  ;;  %581 = vmatpush1.bf16.msra.mxu1 %v2119_v33  ;;  %v2193_v28 = vld [vmem:[%s2845_s3 + $0x20] sm:$0xff]   ;;  %v2195_v31 = vld [vmem:[%s2845_s3 + $0x68] sm:$0xff]  }
  0x20   :  { %607 = vmatprep.subr.bf16.mxu0 %v2122_v32  ;;  %648 = vmatprep.subr.bf16.mxu1 %v2125_v35  ;;  %v2194_v29 = vld [vmem:[%s2845_s3 + $0xe0] sm:$0xff]   ;;  %v2197_v32 = vld [vmem:[%s2845_s3 + $0x28] sm:$0xff]   ;;  %v2199_v35 = vld [vmem:[%s2845_s3 + $0x70] sm:$0xff]  }
  0x21   :  { %v2196_v30 = vld [vmem:[%s2845_s3 + $0xa0] sm:$0xff]   ;;  %v2198_v33 = vld [vmem:[%s2845_s3 + $0xe8] sm:$0xff]  }
  0x22   :  { %558 = vmatmul.mubr.bf16.vlgmr.msra.gmra.mrb[0].mxu0 %v2412_v34  ;;  %599 = vmatmul.mubr.bf16.vlgmr.msra.gmra.mrb[0].mxu1 %v2412_v34 }
  0x23   :  { %608 = vmatpush1.bf16.msra.mxu0 %v2120_v36  ;;  %639 = vmatprep.mubr.bf16.mxu0 %v2265_v1  ;;  %v2201_v36 = vld [vmem:[%s2845_s3 + $0x30] sm:$0xff]  }
  0x24   :  { %609 = vmatprep.subr.bf16.mxu0 %v2128_v37  ;;  %649 = vmatpush1.bf16.msra.mxu1 %v2123_v38  ;;  %v2202_v37 = vld [vmem:[%s2845_s3 + $0xf0] sm:$0xff]  }
  0x25   :  { %680 = vmatprep.mubr.bf16.mxu1 %v2265_v1  ;;  %650 = vmatprep.subr.bf16.mxu1 %v2131_v39  ;;  %v2165_v1 = vld [vmem:[%s2843_s1 + $0x210] ss:$36 sps:$4 sm:$0xff]   ;;  %v2203_v39 = vld [vmem:[%s2845_s3 + $0x78] sm:$0xff]  }
  0x26   :  { %v2204_v38 = vld [vmem:[%s2845_s3 + $0xb0] sm:$0xff]  }
  0x27   :  { %610 = vmatpush1.bf16.msra.mxu0 %v2126_v40  ;;  %v2205_v40 = vld [vmem:[%s2845_s3 + $0x38] sm:$0xff]  }
  0x28   :  { %611 = vmatprep.subr.bf16.mxu0 %v2134_v41  ;;  %651 = vmatpush1.bf16.msra.mxu1 %v2129_v42  ;;  %v2206_v41 = vld [vmem:[%s2845_s3 + $0xf8] sm:$0xff]  }
  0x29   :  { %652 = vmatprep.subr.bf16.mxu1 %v2137_v43  ;;  %v2207_v42 = vld [vmem:[%s2845_s3 + $0xb8] sm:$0xff]   ;;  %v2208_v43 = vld [vmem:[%s2845_s3 + $0x140] sm:$0xff]  }
  0x2b   :  { %612 = vmatpush1.bf16.msra.mxu0 %v2132_v44  ;;  %v2210_v44 = vld [vmem:[%s2845_s3 + $0x1c0] sm:$0xff]  }
  0x2c   :  { %613 = vmatprep.subr.bf16.mxu0 %v2140_v45  ;;  %653 = vmatpush1.bf16.msra.mxu1 %v2135_v46  ;;  %v112_v45 = vlaneseq }
  0x2d   :  { %654 = vmatprep.subr.bf16.mxu1 %v2143_v47 }
  0x2e   :  { %v2650_v46 = vshrl.u32 %v112_v45, 7 }
  0x2f   :  { %614 = vmatpush1.bf16.msra.mxu0 %v2138_v48  ;;  %v2656_v48 = vld [vmem:[%s2846_s2] sm:$0xff] }
  0x30   :  { %615 = vmatprep.subr.bf16.mxu0 %v2146_v49  ;;  %655 = vmatpush1.bf16.msra.mxu1 %v2141_v50  ;;  %v114_v47 = vsub.s32 0, %v2650_v46  ;;  %v118_v49 = vsub.s32 1, %v2650_v46  ;;  %v122_v50 = vsub.s32 2, %v2650_v46 }
  0x31   :  { %656 = vmatprep.subr.bf16.mxu1 %v2149_v51  ;;  %v126_v51 = vsub.s32 3, %v2650_v46 }
  0x33   :  { %616 = vmatpush1.bf16.msra.mxu0 %v2144_v52  ;;  %v115_v52 = vrot.slane %v2656_v48, %v114_v47 }
  0x34   :  { %617 = vmatprep.subr.bf16.mxu0 %v2152_v53  ;;  %657 = vmatpush1.bf16.msra.mxu1 %v2147_v54  ;;  %v119_v53 = vrot.slane %v2656_v48, %v118_v49  ;;  %v123_v54 = vrot.slane %v2656_v48, %v122_v50  ;;  %v2235_v50 = vld [vmem:[%s2845_s3 + $0x178] sm:$0xff]  }
  0x35   :  { %658 = vmatprep.subr.bf16.mxu1 %v2155_v55 }
  0x37   :  { %618 = vmatpush1.bf16.msra.mxu0 %v2150_v56  ;;  %v127_v56 = vrot.slane %v2656_v48, %v126_v51 }
  0x38   :  { %619 = vmatprep.subr.bf16.mxu0 %v2158_v57  ;;  %659 = vmatpush1.bf16.msra.mxu1 %v2153_v58 }
  0x39   :  { %660 = vmatprep.subr.bf16.mxu1 %v2161_v59 }
  0x3b   :  { %620 = vmatpush1.bf16.msra.mxu0 %v2156_v60 }
  0x3c   :  { %621 = vmatprep.subr.bf16.mxu0 %v2164_v61  ;;  %661 = vmatpush1.bf16.msra.mxu1 %v2159_v62 }
  0x3d   :  { %662 = vmatprep.subr.bf16.mxu1 %v2167_v63 }
  0x3f   :  { %622 = vmatpush1.bf16.msra.mxu0 %v2162_v0 }
  0x40   :  { %2009 = vmatprep.subr.bf16.mxu0 %v2266_v4  ;;  %663 = vmatpush1.bf16.msra.mxu1 %v2165_v1 }
  0x41   :  { %1903 = vmatprep.subr.bf16.mxu1 %v2176_v2 }
  0x42   :  { %640 = vmatmul.mubr.bf16.vlgmr.msra.gmra.mrb[4].mxu0 %v2412_v34 }
  0x43   :  { %2010 = vmatpush3.bf16.msra.mxu0 %v2168_v3  ;;  %2025 = vmatprep.mubr.msk.bf16.mxu0 %vm2267_vm0, %v2266_v4 }
  0x44   :  { %681 = vmatmul.mubr.bf16.vlgmr.msra.gmra.mrb[4].mxu1 %v2412_v34  ;;  %2011 = vmatprep.subr.bf16.mxu0 %v2266_v4 }
  0x45   :  { %1904 = vmatpush3.bf16.msra.mxu1 %v2177_v5 }
  0x46   :  { %1905 = vmatprep.subr.bf16.mxu1 %v2179_v7 }
  0x47   :  { %2012 = vmatpush3.bf16.msra.mxu0 %v2169_v6 }
  0x48   :  { %2013 = vmatprep.subr.bf16.mxu0 %v2266_v4 }
  0x49   :  { %1906 = vmatpush3.bf16.msra.mxu1 %v2181_v8 }
  0x4a   :  { %1907 = vmatprep.subr.bf16.mxu1 %v2183_v9 }
  0x4b   :  { %2014 = vmatpush3.bf16.msra.mxu0 %v2170_v10 }
  0x4c   :  { %2015 = vmatprep.subr.bf16.mxu0 %v2266_v4 }
  0x4d   :  { %1908 = vmatpush3.bf16.msra.mxu1 %v2185_v11  ;;  %v2209_v11 = vld [vmem:[%s2845_s3 + $0x100] sm:$0xff]  }
  0x4e   :  { %1909 = vmatprep.subr.bf16.mxu1 %v2187_v12  ;;  %v2211_v12 = vld [vmem:[%s2845_s3 + $0x148] sm:$0xff]  }
  0x4f   :  { %2016 = vmatpush3.bf16.msra.mxu0 %v2171_v13 }
  0x50   :  { %2017 = vmatprep.subr.bf16.mxu0 %v2266_v4 }
  0x51   :  { %1910 = vmatpush3.bf16.msra.mxu1 %v2189_v14 }
  0x52   :  { %1911 = vmatprep.subr.bf16.mxu1 %v2191_v27  ;;  %v2224_v27 = vld [vmem:[%s2845_s3 + $0x198] sm:$0xff]  }
  0x53   :  { %2018 = vmatpush3.bf16.msra.mxu0 %v2172_v15  ;;  %v2212_v15 = vld [vmem:[%s2845_s3 + $0x180] sm:$0xff]  }
  0x54   :  { %2019 = vmatprep.subr.bf16.mxu0 %v2266_v4 }
  0x55   :  { %1912 = vmatpush3.bf16.msra.mxu1 %v2193_v28  ;;  %v2226_v28 = vld [vmem:[%s2845_s3 + $0x1e0] sm:$0xff]  }
  0x56   :  { %1913 = vmatprep.subr.bf16.mxu1 %v2195_v31  ;;  %v2227_v31 = vld [vmem:[%s2845_s3 + $0x168] sm:$0xff]  }
  0x57   :  { %2020 = vmatpush3.bf16.msra.mxu0 %v2173_v16  ;;  %v2214_v16 = vld [vmem:[%s2845_s3 + $0x1c8] sm:$0xff]  }
  0x58   :  { %2021 = vmatprep.subr.bf16.mxu0 %v2266_v4 }
  0x59   :  { %1914 = vmatpush3.bf16.msra.mxu1 %v2197_v32  ;;  %v134_v32 = vsub.s32 5, %v2650_v46 }
  0x5a   :  { %1915 = vmatprep.subr.bf16.mxu1 %v2199_v35  ;;  %v2230_v35 = vld [vmem:[%s2845_s3 + $0x1e8] sm:$0xff]  }
  0x5b   :  { %2022 = vmatpush3.bf16.msra.mxu0 %v2174_v17  ;;  %v2213_v17 = vld [vmem:[%s2845_s3 + $0x108] sm:$0xff]  }
  0x5c   :  { %2023 = vmatprep.subr.bf16.mxu0 %v2266_v4 }
  0x5d   :  { %1916 = vmatpush3.bf16.msra.mxu1 %v2201_v36  ;;  %v142_v36 = vsub.s32 7, %v2650_v46 }
  0x5e   :  { %1917 = vmatprep.subr.bf16.mxu1 %v2203_v39  ;;  %v2231_v39 = vld [vmem:[%s2845_s3 + $0x170] sm:$0xff]  }
  0x5f   :  { %2024 = vmatpush3.bf16.msra.mxu0 %v2175_v18  ;;  %v2215_v18 = vld [vmem:[%s2845_s3 + $0x150] sm:$0xff]   ;;  %v143_v45 = vrot.slane %v2656_v48, %v142_v36 }
  0x60   :  { %1925 = vmatprep.subr.bf16.mxu0 %v2178_v19  ;;  %v2216_v19 = vld [vmem:[%s2845_s3 + $0x188] sm:$0xff]  }
  0x61   :  { %1918 = vmatpush3.bf16.msra.mxu1 %v2205_v40  ;;  %v135_v40 = vrot.slane %v2656_v48, %v134_v32  ;;  %v2256_v32 = vld [vmem:[%s2847_s5 + $0x38] sm:$0xff]  }
  0x62   :  { %2026 = vmatmul.mubr.bf16.vlgmr.msra.gmra.mrb[8].mxu0 %v2412_v34  ;;  %v2200_v34 = vld [vmem:[%s2845_s3 + $0xa8] sm:$0xff]   ;;  %1947 = vmatprep.subr.bf16.mxu1 %v2208_v43  ;;  %v2234_v43 = vld [vmem:[%s2845_s3 + $0x1f0] sm:$0xff]  }
  0x63   :  { %1926 = vmatpush3.bf16.msra.mxu0 %v2180_v20  ;;  %v2218_v20 = vld [vmem:[%s2845_s3 + $0x1d0] sm:$0xff]  }
  0x64   :  { %1927 = vmatprep.subr.bf16.mxu0 %v2182_v21  ;;  %v2217_v21 = vld [vmem:[%s2845_s3 + $0x110] sm:$0xff]  }
  0x67   :  { %1928 = vmatpush3.bf16.msra.mxu0 %v2184_v22  ;;  %v2219_v22 = vld [vmem:[%s2845_s3 + $0x158] sm:$0xff]  }
  0x68   :  { %1929 = vmatprep.subr.bf16.mxu0 %v2186_v23  ;;  %v2220_v23 = vld [vmem:[%s2845_s3 + $0x190] sm:$0xff]  }
  0x6b   :  { %1930 = vmatpush3.bf16.msra.mxu0 %v2188_v24  ;;  %v2222_v24 = vld [vmem:[%s2845_s3 + $0x1d8] sm:$0xff]  }
  0x6c   :  { %1931 = vmatprep.subr.bf16.mxu0 %v2190_v25  ;;  %v2221_v25 = vld [vmem:[%s2845_s3 + $0x118] sm:$0xff]  }
  0x6f   :  { %1932 = vmatpush3.bf16.msra.mxu0 %v2192_v26  ;;  %v2223_v26 = vld [vmem:[%s2845_s3 + $0x160] sm:$0xff]  }
  0x70   :  { %1933 = vmatprep.subr.bf16.mxu0 %v2194_v29  ;;  %v2225_v29 = vld [vmem:[%s2845_s3 + $0x120] sm:$0xff]  }
  0x73   :  { %1934 = vmatpush3.bf16.msra.mxu0 %v2196_v30  ;;  %v130_v30 = vsub.s32 4, %v2650_v46 }
  0x74   :  { %1935 = vmatprep.subr.bf16.mxu0 %v2198_v33  ;;  %v2228_v33 = vld [vmem:[%s2845_s3 + $0x1a0] sm:$0xff]  }
  0x77   :  { %1936 = vmatpush3.bf16.msra.mxu0 %v2200_v34  ;;  %v138_v34 = vsub.s32 6, %v2650_v46  ;;  %v2233_v46 = vld [vmem:[%s2845_s3 + $0x130] sm:$0xff]  }
  0x78   :  { %1937 = vmatprep.subr.bf16.mxu0 %v2202_v37  ;;  %v2229_v37 = vld [vmem:[%s2845_s3 + $0x128] sm:$0xff]  }
  0x7b   :  { %1938 = vmatpush3.bf16.msra.mxu0 %v2204_v38  ;;  %v131_v38 = vrot.slane %v2656_v48, %v130_v30  ;;  %v2254_v30 = vld [vmem:[%s2847_s5 + $0x28] sm:$0xff]  }
  0x7c   :  { %1939 = vmatprep.subr.bf16.mxu0 %v2206_v41  ;;  %v2232_v41 = vld [vmem:[%s2845_s3 + $0x1a8] sm:$0xff]  }
  0x7f   :  { %1940 = vmatpush3.bf16.msra.mxu0 %v2207_v42  ;;  %v139_v42 = vrot.slane %v2656_v48, %v138_v34  ;;  %v2236_v48 = vld [vmem:[%s2845_s3 + $0x1b0] sm:$0xff]   ;;  %v1798_v34 = vld [vmem:[%s2848_s4] ss:$0 sm:$0xff] }
  0x80   :  { %1969 = vmatprep.subr.bf16.mxu0 %v2210_v44 }
  0xf5   :  { %v559_v55 = vpop.f32.mrb[0].mxu0  ;;  %v600_v61 = vpop.f32.mrb[0].mxu1 }
  0xf6   :  { %v560_v57 = vadd.f32 %v559_v55, %v115_v52  ;;  %v561_v58 = vpop.f32.mrb[1].mxu0  ;;  %v601_v63 = vadd.f32 %v600_v61, %v123_v54  ;;  %v602_v1 = vpop.f32.mrb[1].mxu1  ;;  %v2237_v61 = vld [vmem:[%s2845_s3 + $0x138] sm:$0xff]  }
  0xf7   :  { %v562_v59 = vadd.f32 %v561_v58, %v119_v53  ;;  %v563_v60 = vpop.f32.mrb[2].mxu0  ;;  %v603_v3 = vadd.f32 %v602_v1, %v127_v56  ;;  %v604_v5 = vpop.f32.mrb[2].mxu1  ;;  %v2238_v58 = vld [vmem:[%s2845_s3 + $0x1f8] sm:$0xff]  }
  0xf8   :  { %v729_v62 = vmax.f32 %v560_v57, 0.0  ;;  %v564_v0 = vpop.f32.mrb[3].mxu0  ;;  %v731_v6 = vmax.f32 %v601_v63, 0.0  ;;  %v605_v7 = vpop.f32.mrb[3].mxu1 }
  0xf9   :  { %v730_v2 = vmax.f32 %v562_v59, 0.0  ;;  %v732_v8 = vmax.f32 %v603_v3, 0.0 }
  0xfa   :  { %v2257_v9 = vpack.c.bf16 %v729_v62, %v729_v62  ;;  %v2259_v13 = vpack.c.bf16 %v731_v6, %v731_v6  ;;  %v2240_v6 = vld [vmem:[%s2845_s3 + $0x200] sm:$0xff]  }
  0xfb   :  { %v2258_v10 = vpack.c.bf16 %v730_v2, %v730_v2  ;;  %v2260_v14 = vpack.c.bf16 %v732_v8, %v732_v8  ;;  %v2239_v2 = vld [vmem:[%s2845_s3 + $0x1b8] sm:$0xff]  }
  0xfd   :  { %1432 = vmatprep.mubr.bf16.mxu1 %v2258_v10  ;;  %1472 = vmatprep.mubr.bf16.mxu0 %v2260_v14  ;;  %v2242_v10 = vld [vmem:[%s2845_s3 + $0x210] sm:$0xff]   ;;  %v1720_v14 = vld [vmem:[%s2846_s2 + $0x8] ss:$0 sm:$0xff] }
  0xfe   :  { %1433 = vmatmul.mubr.bf16.vlgmr.msra.gmra.mrb[8].mxu1 %v2257_v9  ;;  %1473 = vmatmul.mubr.bf16.vlgmr.msra.gmra.mrb[12].mxu0 %v2259_v13  ;;  %v2241_v9 = vld [vmem:[%s2845_s3 + $0x208] sm:$0xff]  }
  0xff   :  { %1948 = vmatpush3.bf16.msra.mxu1 %v2209_v11  ;;  %1970 = vmatpush3.bf16.msra.mxu0 %v2212_v15  ;;  %v2243_v11 = vld [vmem:[%s2845_s3 + $0x218] sm:$0xff]   ;;  %v2245_v13 = vld [vmem:[%s2845_s3 + $0x228] sm:$0xff]  }
 0x100   :  { %1949 = vmatprep.subr.bf16.mxu1 %v2211_v12  ;;  %1971 = vmatprep.subr.bf16.mxu0 %v2214_v16  ;;  %v2244_v12 = vld [vmem:[%s2845_s3 + $0x220] sm:$0xff]   ;;  %v2246_v16 = vld [vmem:[%s2845_s3 + $0x230] sm:$0xff]  }
 0x103   :  { %1950 = vmatpush3.bf16.msra.mxu1 %v2213_v17  ;;  %1972 = vmatpush3.bf16.msra.mxu0 %v2216_v19 }
 0x104   :  { %1951 = vmatprep.subr.bf16.mxu1 %v2215_v18  ;;  %1973 = vmatprep.subr.bf16.mxu0 %v2218_v20 }
 0x107   :  { %1952 = vmatpush3.bf16.msra.mxu1 %v2217_v21  ;;  %1974 = vmatpush3.bf16.msra.mxu0 %v2220_v23 }
 0x108   :  { %1953 = vmatprep.subr.bf16.mxu1 %v2219_v22  ;;  %1975 = vmatprep.subr.bf16.mxu0 %v2222_v24  ;;  %v2247_v22 = vld [vmem:[%s2845_s3 + $0x238] sm:$0xff]  }
 0x10b   :  { %1954 = vmatpush3.bf16.msra.mxu1 %v2221_v25  ;;  %1976 = vmatpush3.bf16.msra.mxu0 %v2224_v27  ;;  %v2249_v25 = vld [vmem:[%s2847_s5] sm:$0xff]   ;;  %v2251_v27 = vld [vmem:[%s2847_s5 + $0x10] sm:$0xff]  }
 0x10c   :  { %1955 = vmatprep.subr.bf16.mxu1 %v2223_v26  ;;  %1977 = vmatprep.subr.bf16.mxu0 %v2226_v28  ;;  %v2250_v26 = vld [vmem:[%s2847_s5 + $0x8] sm:$0xff]   ;;  %v2252_v28 = vld [vmem:[%s2847_s5 + $0x18] sm:$0xff]  }
 0x10f   :  { %1956 = vmatpush3.bf16.msra.mxu1 %v2225_v29  ;;  %1978 = vmatpush3.bf16.msra.mxu0 %v2228_v33  ;;  %v2253_v29 = vld [vmem:[%s2847_s5 + $0x20] sm:$0xff]  }
 0x110   :  { %1957 = vmatprep.subr.bf16.mxu1 %v2227_v31  ;;  %1979 = vmatprep.subr.bf16.mxu0 %v2230_v35  ;;  %v2255_v31 = vld [vmem:[%s2847_s5 + $0x30] sm:$0xff]  }
 0x113   :  { %1958 = vmatpush3.bf16.msra.mxu1 %v2229_v37  ;;  %1980 = vmatpush3.bf16.msra.mxu0 %v2232_v41 }
 0x114   :  { %1959 = vmatprep.subr.bf16.mxu1 %v2231_v39  ;;  %1981 = vmatprep.subr.bf16.mxu0 %v2234_v43 }
 0x115   :  { %v641_v44 = vpop.f32.mrb[4].mxu0 }
 0x116   :  { %v642_v47 = vadd.f32 %v641_v44, %v131_v38  ;;  %v643_v49 = vpop.f32.mrb[5].mxu0 }
 0x117   :  { %v644_v51 = vadd.f32 %v643_v49, %v135_v40  ;;  %v645_v52 = vpop.f32.mrb[6].mxu0  ;;  %v682_v53 = vpop.f32.mrb[4].mxu1  ;;  %1960 = vmatpush3.bf16.msra.mxu1 %v2233_v46  ;;  %1982 = vmatpush3.bf16.msra.mxu0 %v2236_v48 }
 0x118   :  { %v733_v54 = vmax.f32 %v642_v47, 0.0  ;;  %v683_v55 = vadd.f32 %v682_v53, %v139_v42  ;;  %v646_v56 = vpop.f32.mrb[7].mxu0  ;;  %v684_v57 = vpop.f32.mrb[5].mxu1  ;;  %1961 = vmatprep.subr.bf16.mxu1 %v2235_v50  ;;  %1983 = vmatprep.subr.bf16.mxu0 %v2238_v58 }
 0x119   :  { %v734_v59 = vmax.f32 %v644_v51, 0.0  ;;  %v685_v60 = vadd.f32 %v684_v57, %v143_v45  ;;  %v686_v62 = vpop.f32.mrb[6].mxu1 }
 0x11a   :  { %v735_v63 = vmax.f32 %v683_v55, 0.0  ;;  %v687_v0 = vpop.f32.mrb[7].mxu1  ;;  %v2261_v3 = vpack.c.bf16 %v733_v54, %v733_v54 }
 0x11b   :  { %v736_v1 = vmax.f32 %v685_v60, 0.0  ;;  %1962 = vmatpush3.bf16.msra.mxu1 %v2237_v61  ;;  %v2262_v5 = vpack.c.bf16 %v734_v59, %v734_v59  ;;  %1984 = vmatpush3.bf16.msra.mxu0 %v2239_v2 }
 0x11c   :  { %2029 = vmatprep.subr.bf16.mxu1 %v2266_v4  ;;  %v2263_v7 = vpack.c.bf16 %v735_v63, %v735_v63  ;;  %2049 = vmatprep.subr.bf16.mxu0 %v2266_v4 }
 0x11d   :  { %1512 = vmatprep.mubr.bf16.mxu1 %v2262_v5  ;;  %v2264_v8 = vpack.c.bf16 %v736_v1, %v736_v1  ;;  %v1880_v1 = vld [vmem:[%s2849_s6] ss:$0 sm:$0xff] }
 0x11e   :  { %1513 = vmatmul.mubr.bf16.vlgmr.msra.gmra.mrb[12].mxu1 %v2261_v3 }
 0x11f   :  { %2030 = vmatpush3.bf16.msra.mxu1 %v2240_v6  ;;  %1552 = vmatprep.mubr.bf16.mxu0 %v2264_v8 }
 0x120   :  { %1553 = vmatmul.mubr.bf16.vlgmr.msra.gmra.mrb[16].mxu0 %v2263_v7  ;;  %2031 = vmatprep.subr.bf16.mxu1 %v2266_v4 }
 0x121   :  { %2045 = vmatprep.mubr.msk.bf16.mxu1 %vm2267_vm0, %v2266_v4  ;;  %2065 = vmatprep.mubr.msk.bf16.mxu0 %vm2267_vm0, %v2266_v4 }
 0x122   :  { %2050 = vmatpush3.bf16.msra.mxu0 %v2249_v25 }
 0x123   :  { %2032 = vmatpush3.bf16.msra.mxu1 %v2241_v9  ;;  %2051 = vmatprep.subr.bf16.mxu0 %v2266_v4 }
 0x124   :  { %2033 = vmatprep.subr.bf16.mxu1 %v2266_v4 }
 0x126   :  { %2052 = vmatpush3.bf16.msra.mxu0 %v2250_v26 }
 0x127   :  { %2034 = vmatpush3.bf16.msra.mxu1 %v2242_v10  ;;  %2053 = vmatprep.subr.bf16.mxu0 %v2266_v4 }
 0x128   :  { %2035 = vmatprep.subr.bf16.mxu1 %v2266_v4 }
 0x12a   :  { %2054 = vmatpush3.bf16.msra.mxu0 %v2251_v27 }
 0x12b   :  { %2036 = vmatpush3.bf16.msra.mxu1 %v2243_v11  ;;  %2055 = vmatprep.subr.bf16.mxu0 %v2266_v4 }
 0x12c   :  { %2037 = vmatprep.subr.bf16.mxu1 %v2266_v4 }
 0x12e   :  { %2056 = vmatpush3.bf16.msra.mxu0 %v2252_v28 }
 0x12f   :  { %2038 = vmatpush3.bf16.msra.mxu1 %v2244_v12  ;;  %2057 = vmatprep.subr.bf16.mxu0 %v2266_v4 }
 0x130   :  { %2039 = vmatprep.subr.bf16.mxu1 %v2266_v4 }
 0x132   :  { %2058 = vmatpush3.bf16.msra.mxu0 %v2253_v29 }
 0x133   :  { %2040 = vmatpush3.bf16.msra.mxu1 %v2245_v13  ;;  %2059 = vmatprep.subr.bf16.mxu0 %v2266_v4 }
 0x134   :  { %2041 = vmatprep.subr.bf16.mxu1 %v2266_v4 }
 0x135   :  { %v723_v15 = vpop.f32.mrb[8].mxu0 }
 0x136   :  { %v724_v17 = vadd.f32 %v1720_v14, %v723_v15  ;;  %v2027_v18 = vpop.f32.mrb[9].mxu0  ;;  %2060 = vmatpush3.bf16.msra.mxu0 %v2254_v30 }
 0x137   :  { %v726_v19 = vpop.f32.mrb[10].mxu0  ;;  %2042 = vmatpush3.bf16.msra.mxu1 %v2246_v16  ;;  %2061 = vmatprep.subr.bf16.mxu0 %v2266_v4 }
 0x138   :  { %v737_v20 = vmax.f32 %v724_v17, 0.0  ;;  %v2028_v21 = vpop.f32.mrb[11].mxu0  ;;  %2043 = vmatprep.subr.bf16.mxu1 %v2266_v4 }
 0x13a   :  { %v1893_v23 = vpack.c.bf16 %v737_v20, %v737_v20  ;;  %2062 = vmatpush3.bf16.msra.mxu0 %v2255_v31 }
 0x13b   :  { %2044 = vmatpush3.bf16.msra.mxu1 %v2247_v22  ;;  %2063 = vmatprep.subr.bf16.mxu0 %v2266_v4 }
 0x13c   :  { %779 = vst [vmem:[#allocation2 + $0x20] sm:$0xf] %v1893_v23 }
 0x13e   :  { %2064 = vmatpush3.bf16.msra.mxu0 %v2256_v32 }
 0x143   :  { %v2248_v24 = vld [vmem:[#allocation2 + $0x20] ss:$0 sps:$4 sm:$0xff]  }
 0x144   :  { %2046 = vmatmul.mubr.bf16.vlgmr.msra.gmra.mrb[16].mxu1 %v2248_v24 }
 0x1d1   :  { %v1919_v33 = vpop.f32.mrb[8].mxu1  ;;  %v1941_v38 = vpop.f32.mrb[12].mxu0 }
 0x1d2   :  { %v1920_v35 = vpop.f32.mrb[9].mxu1  ;;  %v1942_v40 = vpop.f32.mrb[13].mxu0 }
 0x1d3   :  { %v1921_v36 = vadd.f32 %v1920_v35, %v1919_v33  ;;  %v1922_v37 = vpop.f32.mrb[10].mxu1  ;;  %v1943_v42 = vadd.f32 %v1942_v40, %v1941_v38  ;;  %v1944_v43 = vpop.f32.mrb[14].mxu0 }
 0x1d4   :  { %v1923_v39 = vpop.f32.mrb[11].mxu1  ;;  %v1945_v44 = vpop.f32.mrb[15].mxu0 }
 0x1d5   :  { %v1435_v41 = vadd.f32 %v1921_v36, %v1798_v34 }
 0x1d7   :  { %v1475_v45 = vadd.f32 %v1943_v42, %v1435_v41 }
 0x1f1   :  { %v1963_v46 = vpop.f32.mrb[12].mxu1 }
 0x1f2   :  { %v1964_v47 = vpop.f32.mrb[13].mxu1 }
 0x1f3   :  { %v1965_v4 = vadd.f32 %v1964_v47, %v1963_v46  ;;  %v1966_v49 = vpop.f32.mrb[14].mxu1  ;;  %v1985_v50 = vpop.f32.mrb[16].mxu0 }
 0x1f4   :  { %v1967_v51 = vpop.f32.mrb[15].mxu1  ;;  %v1986_v52 = vpop.f32.mrb[17].mxu0 }
 0x1f5   :  { %v1515_v53 = vadd.f32 %v1965_v4, %v1475_v45  ;;  %v1987_v48 = vadd.f32 %v1986_v52, %v1985_v50  ;;  %v1988_v54 = vpop.f32.mrb[18].mxu0 }
 0x1f6   :  { %v1989_v55 = vpop.f32.mrb[19].mxu0 }
 0x1f7   :  { %v1555_v56 = vadd.f32 %v1987_v48, %v1515_v53 }
 0x217   :  { %v1594_v57 = vpop.f32.mrb[16].mxu1 }
 0x218   :  { %v1595_v58 = vadd.f32 %v1594_v57, %v1555_v56  ;;  %v2047_v59 = vpop.f32.mrb[17].mxu1 }
 0x219   :  { %v1597_v60 = vpop.f32.mrb[18].mxu1 }
 0x21a   :  { %v1600_v61 = vmax.f32 %v1595_v58, 0.0  ;;  %v2048_v62 = vpop.f32.mrb[19].mxu1 }
 0x21c   :  { %v1601_v63 = vpack.c.bf16 %v1600_v61, %v1600_v61 }
 0x21e   :  { %1602 = vst [vmem:[#allocation3] sm:$0xf] %v1601_v63 }
 0x225   :  { %v1603_v0 = vld [vmem:[#allocation3] sm:$0xf] }
 0x226   :  { %2066 = vmatmul.mubr.bf16.vlgmr.msra.gmra.mrb[20].mxu0 %v1603_v0 }
 0x2f9   :  { %v1709_v2 = vpop.f32.mrb[20].mxu0 }
 0x2fa   :  { %v1710_v3 = vadd.f32 %v1880_v1, %v1709_v2  ;;  %v2067_v5 = vpop.f32.mrb[21].mxu0 }
 0x2fb   :  { %v1712_v6 = vpop.f32.mrb[22].mxu0 }
 0x2fc   :  { %1715 = vst [vmem:[%s2850_s7] sm:$0xff] %v1710_v3  ;;  %v2068_v7 = vpop.f32.mrb[23].mxu0 }

</bundles_post_ra>
